<compile_context>
chip_gen: v6e
topology: v6e:2x2x1
jax: 0.10.0
libtpu: 0.0.40
codegen_flags: <defaults>
</compile_context>

<pallas_src>
import jax
import jax.numpy as jnp
from jax import lax
from jax.experimental import pallas as pl
from jax.experimental.pallas import tpu as pltpu

_LEAKY_SLOPE = 0.2


def _leaky_relu(x, slope=_LEAKY_SLOPE):
    return jnp.where(x > 0, x, slope * x)


def discriminator_kernel(x_ref, w1_ref, b1_ref, w2_ref, b2_ref, w3t_ref, b3_ref,
                         o_ref):
    # Layer 1: [tb, D] @ [D, 256]; operands may be bf16, accumulate in f32.
    h1 = jnp.dot(x_ref[...], w1_ref[...],
                 preferred_element_type=jnp.float32) + b1_ref[...]
    h1 = _leaky_relu(h1)

    # Layer 2: cast the activation to the weight dtype so bf16 weights get a
    # bf16 x bf16 MXU pass (no-op cast when weights are f32).
    h2 = jnp.dot(h1.astype(w2_ref.dtype), w2_ref[...],
                 preferred_element_type=jnp.float32) + b2_ref[...]
    h2 = _leaky_relu(h2)

    # Layer 3 (128 -> 1), computed transposed: [1,128] . [tb,128]^T -> [1, tb].
    # This keeps the output block lane-dense and avoids a degenerate 1-lane
    # output column. w3t_ref is [1, 128] f32, b3_ref is [1, 1] f32.
    h3 = lax.dot_general(w3t_ref[...], h2,
                         dimension_numbers=(((1,), (1,)), ((), ())),
                         preferred_element_type=jnp.float32) + b3_ref[...]

    o_ref[...] = jax.nn.sigmoid(h3).astype(o_ref.dtype)


def _device_kind():
    try:
        return jax.devices()[0].device_kind.lower()
    except Exception:
        return ""


def _default_vmem_limit_bytes(kind):
    if "v7" in kind or "7x" in kind:
        return 48 * 1024 * 1024   # v7x: 64 MiB physical per TC -> leave headroom
    if "v5" in kind or "v6" in kind:
        return 64 * 1024 * 1024   # 128 MiB physical; 16/32 MiB is only the default scope
    return 32 * 1024 * 1024       # unknown generation: stay conservative


def _pick_batch_tile(B, target):
    """Largest divisor of B that is <= target and a multiple of 128 (the
    lane-dense output block needs a 128-multiple last dim when tiling).
    Falls back to the whole batch as a single full-extent tile."""
    start = target - (target % 128)
    for cand in range(start, 0, -128):
        if B % cand == 0:
            return cand
    return B


def discriminator_forward(x, params, *, batch_tile=None, use_bf16=None,
                          vmem_limit_bytes=None):
    """x: [B, input_dim] float32 -> [B, 1] float32.

    params = (w1 [D,256], b1 [1,256], w2 [256,128], b2 [1,128],
              w3t [1,128], b3 [1,1]), all float32.
    Note: the bf16 path casts x itself to bf16 (once, in the wrapper), so
    inputs lose precision — fine for a GAN discriminator forward pass.
    """
    w1, b1, w2, b2, w3t, b3 = params
    B, D = x.shape
    H1 = w1.shape[1]   # 256
    H2 = w2.shape[1]   # 128

    kind = _device_kind()
    if use_bf16 is None:
        # bf16 MXU operands by default on v6e/v7x (f32 accumulation keeps the
        # layer outputs and all elementwise work in f32); v5e/unknown stay f32.
        use_bf16 = ("v6" in kind) or ("v7" in kind) or ("7x" in kind)
    if vmem_limit_bytes is None:
        vmem_limit_bytes = _default_vmem_limit_bytes(kind)

    if use_bf16:
        # Cast once in the wrapper; weights are resident and never re-cast in
        # the kernel. Biases / final-layer weight stay f32.
        x = x.astype(jnp.bfloat16)
        w1 = w1.astype(jnp.bfloat16)
        w2 = w2.astype(jnp.bfloat16)
    mat_bytes = jnp.dtype(x.dtype).itemsize

    # ---- batch tile selection --------------------------------------------
    if batch_tile is None:
        target = min(B, 2048)
        if B >= 256:
            # Guarantee >= 2 grid steps when possible so the "parallel" batch
            # axis can shard across v7x's two TensorCores.
            target = min(target, B // 2)
        tb = _pick_batch_tile(B, target)
    else:
        tb = batch_tile
        assert B % tb == 0, "batch must be divisible by batch_tile"
        if tb != B:
            assert tb % 128 == 0, (
                "a partial batch_tile must be a multiple of 128 "
                "(lane-dense output block / sublane alignment)")

    # ---- VMEM budget -------------------------------------------------------
    # Resident (constant-index) weights are double-buffered by the default
    # pipeline but fetched only once; their footprint does not shrink with tb,
    # so subtract it from the budget instead of letting it shrink the tile.
    resident_bytes = (2 * (D * H1 + H1 * H2) * mat_bytes
                      + 2 * (H1 + 2 * H2 + 1) * 4)

    def per_tile_bytes(t):
        x_in = 2 * t * D * mat_bytes          # double-buffered input tile
        out = 2 * t * 4                       # double-buffered [1, t] f32 out
        act = t * (H1 + H2 + 1) * 4           # live f32 intermediates
        return x_in + out + act

    budget = vmem_limit_bytes - resident_bytes - (2 << 20)   # 2 MiB margin
    while per_tile_bytes(tb) > budget and tb % 256 == 0:
        tb //= 2

    grid = (B // tb,)

    # Weights / biases: constant block index -> resident in VMEM across steps.
    resident = lambda shape: pl.BlockSpec(shape, lambda i: (0, 0))

    out = pl.pallas_call(
        discriminator_kernel,
        out_shape=jax.ShapeDtypeStruct((1, B), jnp.float32),
        grid_spec=pltpu.PrefetchScalarGridSpec(
            num_scalar_prefetch=0,
            grid=grid,
            in_specs=[
                pl.BlockSpec((tb, D), lambda i: (i, 0)),   # x tile (streamed)
                resident((D, H1)),                          # w1
                resident((1, H1)),                          # b1
                resident((H1, H2)),                         # w2
                resident((1, H2)),                          # b2
                resident((1, H2)),                          # w3 (pre-transposed)
                resident((1, 1)),                           # b3
            ],
            # Lane-dense output: block (1, tb) of a (1, B) output row.
            out_specs=pl.BlockSpec((1, tb), lambda i: (0, i)),
        ),
        compiler_params=pltpu.CompilerParams(
            dimension_semantics=("parallel",),
            vmem_limit_bytes=vmem_limit_bytes),
    )(x, w1, b1, w2, b2, w3t, b3)

    # [1, B] -> [B, 1] to mirror the PyTorch module's output shape.
    return out.reshape(B, 1)


def init_params(key, input_dim):
    """Deterministic init mimicking nn.Linear's U(-1/sqrt(fan_in), 1/sqrt(fan_in))."""
    dims = [(input_dim, 256), (256, 128), (128, 1)]
    params = []
    for (fan_in, fan_out) in dims:
        key, kw, kb = jax.random.split(key, 3)
        bound = 1.0 / (fan_in ** 0.5)
        w = jax.random.uniform(kw, (fan_in, fan_out), jnp.float32, -bound, bound)
        b = jax.random.uniform(kb, (1, fan_out), jnp.float32, -bound, bound)
        params.extend([w, b])
    w1, b1, w2, b2, w3, b3 = params
    # Store the final weight pre-transposed ([1, 128]) for the transposed
    # in-kernel layer-3 contraction.
    return (w1, b1, w2, b2, w3.T, b3)


def reference_forward(x, params):
    w1, b1, w2, b2, w3t, b3 = params
    h = jnp.dot(x, w1) + b1
    h = jnp.where(h > 0, h, _LEAKY_SLOPE * h)
    h = jnp.dot(h, w2) + b2
    h = jnp.where(h > 0, h, _LEAKY_SLOPE * h)
    h = jnp.dot(h, w3t.T) + b3
    return jax.nn.sigmoid(h)


if __name__ == "__main__":
    key = jax.random.PRNGKey(0)
    k_x, k_p = jax.random.split(key)

    batch, input_dim = 256, 64
    x = jax.random.normal(k_x, (batch, input_dim), jnp.float32)
    params = init_params(k_p, input_dim)
    ref = reference_forward(x, params)

    # 1) f32 path, auto tile -> tb=128, grid=(2,): exercises the tiled,
    #    lane-dense-output path.
    out = jax.block_until_ready(discriminator_forward(x, params, use_bf16=False))
    assert out.shape == (batch, 1)
    assert jnp.allclose(out, ref, atol=1e-5, rtol=1e-5), "f32 (tiled) mismatch"

    # 2) f32 path, whole batch in one tile (grid=(1,)).
    out2 = jax.block_until_ready(
        discriminator_forward(x, params, batch_tile=batch, use_bf16=False))
    assert jnp.allclose(out2, ref, atol=1e-5, rtol=1e-5), "f32 (single tile) mismatch"

    # 3) bf16 matmul operands with f32 accumulation (v6e/v7x fast path);
    #    compared against the f32 reference with a relaxed tolerance.
    out3 = jax.block_until_ready(discriminator_forward(x, params, use_bf16=True))
    assert jnp.allclose(out3, ref, atol=5e-2, rtol=0.0), "bf16 mismatch"

    # 4) fully-automatic defaults (generation-aware bf16 / VMEM limit).
    out4 = jax.block_until_ready(discriminator_forward(x, params))
    assert jnp.allclose(out4, ref, atol=5e-2, rtol=0.0), "auto-default mismatch"

    print("KERNEL_OK")
</pallas_src>

<mosaic_0001>
module attributes {stable_mosaic.version = 11 : i64} {
  func.func @discriminator_kernel(%arg0: i32, %arg1: memref<128x64xf32, #tpu.memory_space<vmem>>, %arg2: memref<64x256xf32, #tpu.memory_space<vmem>>, %arg3: memref<1x256xf32, #tpu.memory_space<vmem>>, %arg4: memref<256x128xf32, #tpu.memory_space<vmem>>, %arg5: memref<1x128xf32, #tpu.memory_space<vmem>>, %arg6: memref<1x128xf32, #tpu.memory_space<vmem>>, %arg7: memref<1x1xf32, #tpu.memory_space<vmem>>, %arg8: memref<1x128xf32, #tpu.memory_space<vmem>>) attributes {dimension_semantics = [#tpu.dimension_semantics<parallel>], iteration_bounds = array<i64: 2>, scalar_prefetch = 0 : i64, scratch_operands = 0 : i64, tpu.core_type = #tpu.core_type<tc>, window_params = [{transform_indices = @transform_0, window_bounds = array<i64: 128, 64>}, {pipeline_mode = #tpu.pipeline_mode<synchronous>, transform_indices = @transform_1, window_bounds = array<i64: 64, 256>}, {pipeline_mode = #tpu.pipeline_mode<synchronous>, transform_indices = @transform_2, window_bounds = array<i64: 1, 256>}, {pipeline_mode = #tpu.pipeline_mode<synchronous>, transform_indices = @transform_3, window_bounds = array<i64: 256, 128>}, {pipeline_mode = #tpu.pipeline_mode<synchronous>, transform_indices = @transform_4, window_bounds = array<i64: 1, 128>}, {pipeline_mode = #tpu.pipeline_mode<synchronous>, transform_indices = @transform_5, window_bounds = array<i64: 1, 128>}, {pipeline_mode = #tpu.pipeline_mode<synchronous>, transform_indices = @transform_6, window_bounds = array<i64: 1, 1>}, {transform_indices = @transform_7, window_bounds = array<i64: 1, 128>}]} {
    %c0 = arith.constant 0 : index
    %c0_0 = arith.constant 0 : index
    %0 = vector.load %arg1[%c0, %c0_0] : memref<128x64xf32, #tpu.memory_space<vmem>>, vector<128x64xf32>
    %c0_1 = arith.constant 0 : index
    %c0_2 = arith.constant 0 : index
    %1 = vector.load %arg2[%c0_1, %c0_2] : memref<64x256xf32, #tpu.memory_space<vmem>>, vector<64x256xf32>
    %cst = arith.constant dense<0.000000e+00> : vector<128x256xf32>
    %2 = tpu.matmul %0, %1, %cst {dimension_numbers = #tpu.dot_dimension_numbers<[1], [0], [0], [1], [0, 0, 1, 1], [], []>} : vector<128x64xf32>, vector<64x256xf32>, vector<128x256xf32> -> vector<128x256xf32>
    %c0_3 = arith.constant 0 : index
    %c0_4 = arith.constant 0 : index
    %3 = vector.load %arg3[%c0_3, %c0_4] : memref<1x256xf32, #tpu.memory_space<vmem>>, vector<1x256xf32>
    %4 = vector.broadcast %3 : vector<1x256xf32> to vector<128x256xf32>
    %5 = arith.addf %2, %4 : vector<128x256xf32>
    %cst_5 = arith.constant 0.000000e+00 : f32
    %6 = vector.broadcast %cst_5 : f32 to vector<128x256xf32>
    %7 = arith.cmpf ogt, %5, %6 : vector<128x256xf32>
    %cst_6 = arith.constant 2.000000e-01 : f32
    %8 = vector.broadcast %cst_6 : f32 to vector<128x256xf32>
    %9 = arith.mulf %8, %5 : vector<128x256xf32>
    %10 = arith.select %7, %5, %9 : vector<128x256xi1>, vector<128x256xf32>
    %c0_7 = arith.constant 0 : index
    %c0_8 = arith.constant 0 : index
    %11 = vector.load %arg4[%c0_7, %c0_8] : memref<256x128xf32, #tpu.memory_space<vmem>>, vector<256x128xf32>
    %cst_9 = arith.constant dense<0.000000e+00> : vector<128x128xf32>
    %12 = tpu.matmul %10, %11, %cst_9 {dimension_numbers = #tpu.dot_dimension_numbers<[1], [0], [0], [1], [0, 0, 1, 1], [], []>} : vector<128x256xf32>, vector<256x128xf32>, vector<128x128xf32> -> vector<128x128xf32>
    %c0_10 = arith.constant 0 : index
    %c0_11 = arith.constant 0 : index
    %13 = vector.load %arg5[%c0_10, %c0_11] : memref<1x128xf32, #tpu.memory_space<vmem>>, vector<1x128xf32>
    %14 = vector.broadcast %13 : vector<1x128xf32> to vector<128x128xf32>
    %15 = arith.addf %12, %14 : vector<128x128xf32>
    %cst_12 = arith.constant 0.000000e+00 : f32
    %16 = vector.broadcast %cst_12 : f32 to vector<128x128xf32>
    %17 = arith.cmpf ogt, %15, %16 : vector<128x128xf32>
    %cst_13 = arith.constant 2.000000e-01 : f32
    %18 = vector.broadcast %cst_13 : f32 to vector<128x128xf32>
    %19 = arith.mulf %18, %15 : vector<128x128xf32>
    %20 = arith.select %17, %15, %19 : vector<128x128xi1>, vector<128x128xf32>
    %c0_14 = arith.constant 0 : index
    %c0_15 = arith.constant 0 : index
    %21 = vector.load %arg6[%c0_14, %c0_15] : memref<1x128xf32, #tpu.memory_space<vmem>>, vector<1x128xf32>
    %cst_16 = arith.constant dense<0.000000e+00> : vector<1x128xf32>
    %22 = tpu.matmul %21, %20, %cst_16 {dimension_numbers = #tpu.dot_dimension_numbers<[1], [1], [0], [0], [0, 0, 1, 0], [], []>} : vector<1x128xf32>, vector<128x128xf32>, vector<1x128xf32> -> vector<1x128xf32>
    %c0_17 = arith.constant 0 : index
    %c0_18 = arith.constant 0 : index
    %23 = vector.load %arg7[%c0_17, %c0_18] : memref<1x1xf32, #tpu.memory_space<vmem>>, vector<1x1xf32>
    %24 = vector.broadcast %23 : vector<1x1xf32> to vector<1x128xf32>
    %25 = arith.addf %22, %24 : vector<1x128xf32>
    %26 = arith.negf %25 : vector<1x128xf32>
    %27 = math.exp %26 : vector<1x128xf32>
    %cst_19 = arith.constant 1.000000e+00 : f32
    %28 = vector.broadcast %cst_19 : f32 to vector<1x128xf32>
    %29 = arith.addf %28, %27 : vector<1x128xf32>
    %30 = arith.divf %28, %29 : vector<1x128xf32>
    %c0_20 = arith.constant 0 : index
    %c0_21 = arith.constant 0 : index
    %31 = vector.load %arg8[%c0_20, %c0_21] : memref<1x128xf32, #tpu.memory_space<vmem>>, vector<1x128xf32>
    tpu.vector_store %arg8[%c0_20, %c0_21], %30 {strides = array<i32>} : memref<1x128xf32, #tpu.memory_space<vmem>>, vector<1x128xf32>,
    return
  }
  func.func @transform_0(%arg0: i32) -> (i32, i32) {
    %c0_i32 = arith.constant 0 : i32
    %c0_i32_0 = arith.constant 0 : i32
    return %arg0, %c0_i32 : i32, i32
  }
  func.func @transform_1(%arg0: i32) -> (i32, i32) {
    %c0_i32 = arith.constant 0 : i32
    %c0_i32_0 = arith.constant 0 : i32
    %c0_i32_1 = arith.constant 0 : i32
    return %c0_i32, %c0_i32_0 : i32, i32
  }
  func.func @transform_2(%arg0: i32) -> (i32, i32) {
    %c0_i32 = arith.constant 0 : i32
    %c0_i32_0 = arith.constant 0 : i32
    %c0_i32_1 = arith.constant 0 : i32
    return %c0_i32, %c0_i32_0 : i32, i32
  }
  func.func @transform_3(%arg0: i32) -> (i32, i32) {
    %c0_i32 = arith.constant 0 : i32
    %c0_i32_0 = arith.constant 0 : i32
    %c0_i32_1 = arith.constant 0 : i32
    return %c0_i32, %c0_i32_0 : i32, i32
  }
  func.func @transform_4(%arg0: i32) -> (i32, i32) {
    %c0_i32 = arith.constant 0 : i32
    %c0_i32_0 = arith.constant 0 : i32
    %c0_i32_1 = arith.constant 0 : i32
    return %c0_i32, %c0_i32_0 : i32, i32
  }
  func.func @transform_5(%arg0: i32) -> (i32, i32) {
    %c0_i32 = arith.constant 0 : i32
    %c0_i32_0 = arith.constant 0 : i32
    %c0_i32_1 = arith.constant 0 : i32
    return %c0_i32, %c0_i32_0 : i32, i32
  }
  func.func @transform_6(%arg0: i32) -> (i32, i32) {
    %c0_i32 = arith.constant 0 : i32
    %c0_i32_0 = arith.constant 0 : i32
    %c0_i32_1 = arith.constant 0 : i32
    return %c0_i32, %c0_i32_0 : i32, i32
  }
  func.func @transform_7(%arg0: i32) -> (i32, i32) {
    %c0_i32 = arith.constant 0 : i32
    %c0_i32_0 = arith.constant 0 : i32
    return %c0_i32, %arg0 : i32, i32
  }
}

</mosaic_0001>

<bundles_post_ra>
// kernel: tpu_custom_call.1
= control target key start
LH: loop header
LB: loop body
LE: loop exit
PB: predicated region body
PF: predicated region fallthrough
CT: control target
= control target key end

     0   :  { %s1731_s0 = inlined_call_operand.vmem [shape: f32[256,64], index: 0, kind: input, shape index: {}]   ;;  %s1732_s1 = inlined_call_operand.vmem [shape: f32[64,256], index: 1, kind: input, shape index: {}]   ;;  %s1733_s2 = inlined_call_operand.vmem [shape: f32[1,256], index: 2, kind: input, shape index: {}]   ;;  %s1734_s3 = inlined_call_operand.vmem [shape: f32[256,128], index: 3, kind: input, shape index: {}]   ;;  %s1735_s4 = inlined_call_operand.vmem [shape: f32[1,128], index: 4, kind: input, shape index: {}]   ;;  %s1736_s5 = inlined_call_operand.vmem [shape: f32[1,128], index: 5, kind: input, shape index: {}]   ;;  %s1737_s6 = inlined_call_operand.<no memory space> [shape: f32[1,1], index: 6, kind: input, shape index: {}]   ;;  %s1738_s7 = inlined_call_operand.hbm [shape: f32[1,256], index: 7, kind: output, shape index: {}]  }
   0x1   :  { %v12_v0 = vstv %s1737_s6 }
   0x2   :  { %13 = vst [vmem:[#allocation2] sm:$0x1] %v12_v0 }
   0x3   :  { %14 = vsyncpa [#allocation4], 0 }
   0x4   :  { %16 = vsyncpa [#allocation4 + $0x1], 0  ;;  %s1333_s26 = smov 0   ;;  %s1335_s27 = smov 0  }
   0x5   :  { %s1337_s28 = smov 0   ;;  %s1339_s29 = smov 0  }
   0x6 LB: > { %s1017_s6 = sadd.s32 4294967295, %s1284_s29   ;;  %s1018_s30 = sadd.s32 4294967294, %s1284_s29   ;;  %s1284_s29 = sphi %s1339_s29, %s1744_s29   ;;  %s1280_s28 = sphi %s1337_s28, %s1743_s28   ;;  %s1276_s27 = sphi %s1335_s27, %s1742_s27   ;;  %s1272_s26 = sphi %s1333_s26, %s1741_s26  }
   0x7   : > { %s1356_s8 = sadd.s32 1, %s1284_s29   ;;  %s181_s9 = sadd.s32 1, %s1280_s28 }
   0x8   : > { %s178_s10 = ssub.s32 %s1284_s29, %s1356_s8  ;;  %p191_p0 = scmp.ne.s32.totalorder %s1280_s28, %s1276_s27 }
   0x9   : > { %p179_p1 = scmp.eq.s32.totalorder %s178_s10, 0  ;;  %p192_p2 = scmp.eq.s32.totalorder %s1017_s6, 1 }
   0xa   : > { %p197_p3 = scmp.ne.s32.totalorder %s1276_s27, %s1272_s26  ;;  %p198_p4 = scmp.eq.s32.totalorder %s1018_s30, 1 }
   0xb   : > { %s1366_s11 = scalar_select %p179_p1, %s1280_s28, %s181_s9  }
   0xc   : > { %p1368_p5 = por %p192_p2, %p191_p0  ;;  %p1372_p6 = por %p198_p4, %p197_p3 }
   0xd   : > { %p1021_p7 = scmp.ge.s32.totalorder %s1284_s29, 1  ;;  %p243_p8 = scmp.lt.s32.totalorder %s1284_s29, 3 }
   0xf   : > { %p244_p9 = pnand %p1021_p7, %p243_p8 }
  0x10   : > { %s1387_s20 = sshll.u32 (!%p244_p9), %s1017_s6, 4  ;;  %s272_s21 = sand.u32 (!%p244_p9), 1, %s1276_s27  }
  0x11   : > { %247 = sbr.rel (%p244_p9) target bundleno = 805 (0x325), region = 48  ;;  %p275_p10 = scmp.lt.s32.totalorder (!%p244_p9), %s1387_s20, 31 }
  0x12   : > { %s273_s22 = scalar_lea.vmem (!%p244_p9), [#allocation3], %s272_s21  ;;  %s1696_s25 = scalar_lea.hbm (!%p244_p9), %s1738_s7, %s1387_s20 }
  0x13   : > { %s951_s6 = scalar_lea.sflag (!%p244_p9), [#allocation4], %s272_s21  ;;  %s1289_s9 = smov (!%p244_p9), [#allocation3]  }
  0x14   : > { %s1228_s14 = sshll.u32 (!%p244_p9), %s1289_s9, 4  ;;  %s1229_s14 = int_to_ptr.vmem [resolvable:$false] %s1228_s14 }
  0x15   : > { %s1230_s15 = scalar_lea.vmem (!%p244_p9), %s1229_s14, 32 }
  0x16   : > { %v311_v1 = vld [vmem:[%s1732_s1 + $0x78] sm:$0xff]  ;;  %v310_v2 = vld [vmem:[%s1732_s1 + $0x70] sm:$0xff]  ;;  %v309_v3 = vld [vmem:[%s1732_s1 + $0x68] sm:$0xff]  ;;  %v1286_v5 = vmov 0.0   ;;  %s276_s10 = scalar_select %p275_p10, %s1387_s20, 31  ;;  %vm324_vm0 = vcmask 523264  }
  0x17   : > { %389 = vmatprep.subr.mxu0 %v311_v1  ;;  %v308_v4 = vld [vmem:[%s1732_s1 + $0x60] sm:$0xff]  ;;  %437 = vmatprep.mubr.f32.mxu0 %v1286_v5  ;;  %v307_v6 = vld [vmem:[%s1732_s1 + $0x58] sm:$0xff]  ;;  %v306_v7 = vld [vmem:[%s1732_s1 + $0x50] sm:$0xff] }
  0x18   : > { %390 = vmatpush1.msra.mxu0 %v310_v2  ;;  %v305_v8 = vld [vmem:[%s1732_s1 + $0x48] sm:$0xff]  ;;  %v304_v9 = vld [vmem:[%s1732_s1 + $0x40] sm:$0xff]  ;;  %v661_v10 = vld [vmem:[%s1734_s3 + $0xf8] sm:$0xff]  ;;  %s1023_s18 = sshll.u32 %s276_s10, 3  ;;  %v314_v2 = vlaneseq }
  0x19   : > { %391 = vmatprep.subr.mxu0 %v309_v3  ;;  %v645_v11 = vld [vmem:[%s1734_s3 + $0x78] sm:$0xff]  ;;  %1045 = vmatprep.subr.mxu1 %v661_v10  ;;  %v660_v13 = vld [vmem:[%s1734_s3 + $0xf0] sm:$0xff]  ;;  %v659_v16 = vld [vmem:[%s1734_s3 + $0xe8] sm:$0xff]  ;;  %s1443_s30 = scalar_lea.vmem %s1731_s0, %s1023_s18  ;;  %s963_s18 = sshll.u32 %s273_s22, 4  ;;  %s964_s18 = int_to_ptr.vmem [resolvable:$true] %s963_s18 }
  0x1a   : > { %392 = vmatpush1.msra.mxu0 %v308_v4  ;;  %v303_v12 = vld [vmem:[%s1732_s1 + $0x38] sm:$0xff]  ;;  %v644_v14 = vld [vmem:[%s1734_s3 + $0x70] sm:$0xff]  ;;  %1046 = vmatpush3.msra.mxu1 %v645_v11  ;;  %v301_v17 = vld [vmem:[%s1732_s1 + $0x28] sm:$0xff]  ;;  %v1580_v3 = vshrl.u32 %v314_v2, 7  ;;  %s1224_s10 = scalar_lea.vmem %s964_s18, 16  ;;  %p1231_p0 = scmp.lt.s32.totalorder %s964_s18, %s1229_s14 }
  0x1b   : > { %393 = vmatprep.subr.mxu0 %v307_v6  ;;  %v302_v15 = vld [vmem:[%s1732_s1 + $0x30] sm:$0xff]  ;;  %1047 = vmatprep.subr.mxu1 %v660_v13  ;;  %v300_v18 = vld [vmem:[%s1732_s1 + $0x20] sm:$0xff]  ;;  %v299_v19 = vld [vmem:[%s1732_s1 + $0x18] sm:$0xff]  ;;  %p1225_p11 = scmp.ne.s32.totalorder %s964_s18, %s1224_s10  ;;  %p1232_p1 = scmp.lt.s32.totalorder %s1230_s15, %s1224_s10 }
  0x1c   : > { %394 = vmatpush1.msra.mxu0 %v306_v7  ;;  %1048 = vmatpush3.msra.mxu1 %v644_v14  ;;  %v298_v20 = vld [vmem:[%s1732_s1 + $0x10] sm:$0xff]  ;;  %v297_v21 = vld [vmem:[%s1732_s1 + $0x8] sm:$0xff]  ;;  %v658_v23 = vld [vmem:[%s1734_s3 + $0xe0] sm:$0xff]  ;;  %v316_v4 = vsub.s32 0, %v1580_v3  ;;  %v320_v7 = vsub.s32 1, %v1580_v3 }
  0x1d   : > { %395 = vmatprep.subr.mxu0 %v305_v8  ;;  %1049 = vmatprep.subr.mxu1 %v659_v16  ;;  %v643_v22 = vld [vmem:[%s1734_s3 + $0x68] sm:$0xff]  ;;  %v296_v24 = vld [vmem:[%s1732_s1] sm:$0xff]  ;;  %v657_v26 = vld [vmem:[%s1734_s3 + $0xd8] sm:$0xff]  ;;  %p1226_p12 = pnand %p1225_p11, %p1368_p5  ;;  %p1233_p2 = por %p1232_p1, %p1231_p0 }
  0x1e   : > { %396 = vmatpush1.msra.mxu0 %v304_v9  ;;  %1050 = vmatpush3.msra.mxu1 %v643_v22  ;;  %v642_v25 = vld [vmem:[%s1734_s3 + $0x60] sm:$0xff]  ;;  %v641_v28 = vld [vmem:[%s1734_s3 + $0x58] sm:$0xff]  ;;  %v656_v29 = vld [vmem:[%s1734_s3 + $0xd0] sm:$0xff] }
  0x1f   : > { %397 = vmatprep.subr.mxu0 %v303_v12  ;;  %v280_v27 = vld [vmem:[%s1443_s30] sm:$0xff]  ;;  %1051 = vmatprep.subr.mxu1 %v658_v23  ;;  %v640_v30 = vld [vmem:[%s1734_s3 + $0x50] sm:$0xff]  ;;  %v655_v31 = vld [vmem:[%s1734_s3 + $0xc8] sm:$0xff]  ;;  %p1227_p13 = pneg %p1226_p12 }
  0x20   : > { %398 = vmatpush1.msra.mxu0 %v302_v15  ;;  %1052 = vmatpush3.msra.mxu1 %v642_v25  ;;  %v281_v32 = vld [vmem:[%s1443_s30 + $0x8] sm:$0xff]  ;;  %v654_v34 = vld [vmem:[%s1734_s3 + $0xc0] sm:$0xff]  ;;  %v653_v36 = vld [vmem:[%s1734_s3 + $0xb8] sm:$0xff] }
  0x21   : > { %399 = vmatprep.subr.mxu0 %v301_v17  ;;  %1053 = vmatprep.subr.mxu1 %v657_v26  ;;  %v639_v33 = vld [vmem:[%s1734_s3 + $0x48] sm:$0xff]  ;;  %v638_v35 = vld [vmem:[%s1734_s3 + $0x40] sm:$0xff]  ;;  %v282_v37 = vld [vmem:[%s1443_s30 + $0x10] sm:$0xff]  ;;  %p1234_p3 = pnand %p1233_p2, %p1227_p13 }
  0x22   : > { %400 = vmatpush1.msra.mxu0 %v300_v18  ;;  %1054 = vmatpush3.msra.mxu1 %v641_v28  ;;  %v637_v38 = vld [vmem:[%s1734_s3 + $0x38] sm:$0xff]  ;;  %v652_v39 = vld [vmem:[%s1734_s3 + $0xb0] sm:$0xff]  ;;  %v651_v41 = vld [vmem:[%s1734_s3 + $0xa8] sm:$0xff] }
  0x23   : > { %401 = vmatprep.subr.mxu0 %v299_v19  ;;  %1055 = vmatprep.subr.mxu1 %v656_v29  ;;  %v636_v40 = vld [vmem:[%s1734_s3 + $0x30] sm:$0xff]  ;;  %v283_v42 = vld [vmem:[%s1443_s30 + $0x18] sm:$0xff]  ;;  %v635_v43 = vld [vmem:[%s1734_s3 + $0x28] sm:$0xff] }
  0x24   : > { %402 = vmatpush1.msra.mxu0 %v298_v20  ;;  %1056 = vmatpush3.msra.mxu1 %v640_v30  ;;  %v650_v44 = vld [vmem:[%s1734_s3 + $0xa0] sm:$0xff]  ;;  %v285_v46 = vld [vmem:[%s1443_s30 + $0x28] sm:$0xff]  ;;  %v286_v47 = vld [vmem:[%s1443_s30 + $0x30] sm:$0xff] }
  0x25   : > { %403 = vmatprep.subr.mxu0 %v297_v21  ;;  %1057 = vmatprep.subr.mxu1 %v655_v31  ;;  %v284_v45 = vld [vmem:[%s1443_s30 + $0x20] sm:$0xff]  ;;  %v287_v48 = vld [vmem:[%s1443_s30 + $0x38] sm:$0xff]  ;;  %v289_v50 = vld [vmem:[%s1443_s30 + $0x48] sm:$0xff] }
  0x26   : > { %404 = vmatpush1.msra.mxu0 %v296_v24  ;;  %1058 = vmatpush3.msra.mxu1 %v639_v33  ;;  %v288_v49 = vld [vmem:[%s1443_s30 + $0x40] sm:$0xff]  ;;  %v290_v51 = vld [vmem:[%s1443_s30 + $0x50] sm:$0xff]  ;;  %v291_v52 = vld [vmem:[%s1443_s30 + $0x58] sm:$0xff] }
  0x27   : > { %1024 = vmatmul.mubr.msk.f32.vlgmr.msra.gmra.mxu0 %vm324_vm0, %v280_v27  ;;  %1142 = vmatprep.subr.mxu0 %v1286_v5  ;;  %v292_v53 = vld [vmem:[%s1443_s30 + $0x60] sm:$0xff]  ;;  %v293_v54 = vld [vmem:[%s1443_s30 + $0x68] sm:$0xff]  ;;  %v294_v55 = vld [vmem:[%s1443_s30 + $0x70] sm:$0xff] }
  0x28   : > { %443 = vmatprep.mubr.f32.mxu0 %v1286_v5  ;;  %1059 = vmatprep.subr.mxu1 %v654_v34  ;;  %v295_v56 = vld [vmem:[%s1443_s30 + $0x78] sm:$0xff]  ;;  %v634_v57 = vld [vmem:[%s1734_s3 + $0x20] sm:$0xff]  ;;  %v648_v60 = vld [vmem:[%s1734_s3 + $0x90] sm:$0xff] }
  0x29   : > { %1060 = vmatpush3.msra.mxu1 %v638_v35  ;;  %v649_v58 = vld [vmem:[%s1734_s3 + $0x98] sm:$0xff]  ;;  %v632_v61 = vld [vmem:[%s1734_s3 + $0x10] sm:$0xff]  ;;  %v647_v62 = vld [vmem:[%s1734_s3 + $0x88] sm:$0xff] }
  0x2a   : > { %1061 = vmatprep.subr.mxu1 %v653_v36  ;;  %v633_v59 = vld [vmem:[%s1734_s3 + $0x18] sm:$0xff]  ;;  %v631_v63 = vld [vmem:[%s1734_s3 + $0x8] sm:$0xff]  ;;  %v646_v0 = vld [vmem:[%s1734_s3 + $0x80] sm:$0xff] }
  0x2b   : > { %1025 = vmatmul.mubr.msk.f32.gmra.mxu0 %vm324_vm0, %v281_v32  ;;  %1062 = vmatpush3.msra.mxu1 %v637_v38  ;;  %v630_v1 = vld [vmem:[%s1734_s3] sm:$0xff] }
  0x2c   : > { %449 = vmatprep.mubr.f32.mxu0 %v1286_v5  ;;  %1063 = vmatprep.subr.mxu1 %v652_v39  ;;  %v312_v6 = vld [vmem:[%s1733_s2] sm:$0x3] }
  0x2d   : > { %1064 = vmatpush3.msra.mxu1 %v636_v40  ;;  %v1589_v8 = vrot.slane %v312_v6, %v316_v4  ;;  %v1591_v9 = vrot.slane %v312_v6, %v320_v7 }
  0x2e   : > { %1065 = vmatprep.subr.mxu1 %v651_v41 }
  0x2f   : > { %1026 = vmatmul.mubr.msk.f32.gmra.mxu0 %vm324_vm0, %v282_v37  ;;  %1066 = vmatpush3.msra.mxu1 %v635_v43 }
  0x30   : > { %455 = vmatprep.mubr.f32.mxu0 %v1286_v5  ;;  %1067 = vmatprep.subr.mxu1 %v650_v44 }
  0x31   : > { %1068 = vmatpush3.msra.mxu1 %v634_v57 }
  0x32   : > { %1069 = vmatprep.subr.mxu1 %v649_v58 }
  0x33   : > { %1027 = vmatmul.mubr.msk.f32.gmra.mxu0 %vm324_vm0, %v283_v42  ;;  %1070 = vmatpush3.msra.mxu1 %v633_v59 }
  0x34   : > { %461 = vmatprep.mubr.f32.mxu0 %v1286_v5  ;;  %1071 = vmatprep.subr.mxu1 %v648_v60 }
  0x35   : > { %1072 = vmatpush3.msra.mxu1 %v632_v61 }
  0x36   : > { %1073 = vmatprep.subr.mxu1 %v647_v62 }
  0x37   : > { %1028 = vmatmul.mubr.msk.f32.gmra.mxu0 %vm324_vm0, %v284_v45  ;;  %1074 = vmatpush3.msra.mxu1 %v631_v63 }
  0x38   : > { %467 = vmatprep.mubr.f32.mxu0 %v1286_v5  ;;  %1075 = vmatprep.subr.mxu1 %v646_v0 }
  0x39   : > { %1076 = vmatpush3.msra.mxu1 %v630_v1 }
  0x3b   : > { %1029 = vmatmul.mubr.msk.f32.gmra.mxu0 %vm324_vm0, %v285_v46 }
  0x3c   : > { %473 = vmatprep.mubr.f32.mxu0 %v1286_v5 }
  0x3f   : > { %1030 = vmatmul.mubr.msk.f32.gmra.mxu0 %vm324_vm0, %v286_v47 }
  0x40   : > { %479 = vmatprep.mubr.f32.mxu0 %v1286_v5 }
  0x43   : > { %1031 = vmatmul.mubr.msk.f32.gmra.mxu0 %vm324_vm0, %v287_v48 }
  0x44   : > { %485 = vmatprep.mubr.f32.mxu0 %v1286_v5 }
  0x47   : > { %1032 = vmatmul.mubr.msk.f32.gmra.mxu0 %vm324_vm0, %v288_v49 }
  0x48   : > { %491 = vmatprep.mubr.f32.mxu0 %v1286_v5 }
  0x4b   : > { %1033 = vmatmul.mubr.msk.f32.gmra.mxu0 %vm324_vm0, %v289_v50 }
  0x4c   : > { %497 = vmatprep.mubr.f32.mxu0 %v1286_v5 }
  0x4f   : > { %1034 = vmatmul.mubr.msk.f32.gmra.mxu0 %vm324_vm0, %v290_v51 }
  0x50   : > { %503 = vmatprep.mubr.f32.mxu0 %v1286_v5 }
  0x53   : > { %1035 = vmatmul.mubr.msk.f32.gmra.mxu0 %vm324_vm0, %v291_v52 }
  0x54   : > { %509 = vmatprep.mubr.f32.mxu0 %v1286_v5 }
  0x57   : > { %1036 = vmatmul.mubr.msk.f32.gmra.mxu0 %vm324_vm0, %v292_v53 }
  0x58   : > { %515 = vmatprep.mubr.f32.mxu0 %v1286_v5 }
  0x5b   : > { %1037 = vmatmul.mubr.msk.f32.gmra.mxu0 %vm324_vm0, %v293_v54 }
  0x5c   : > { %521 = vmatprep.mubr.f32.mxu0 %v1286_v5 }
  0x5f   : > { %1038 = vmatmul.mubr.msk.f32.gmra.mxu0 %vm324_vm0, %v294_v55 }
  0x60   : > { %527 = vmatprep.mubr.f32.mxu0 %v1286_v5 }
  0x63   : > { %1039 = vmatmul.mubr.msk.f32.gmra.mxu0 %vm324_vm0, %v295_v56 }
  0xe7   : > { %v439_v10 = vpop.f32.mrf.mxu0 }
  0xe8   : > { %v440_v11 = vadd.f32 %v439_v10, %v1589_v8 }
  0xe9   : > { %v441_v12 = vpop.f32.mrf.mxu0 }
  0xea   : > { %v442_v13 = vadd.f32 %v441_v12, %v1591_v9  ;;  %v566_v14 = vmul.f32 0.2, %v440_v11  ;;  %vm534_vm2 = vcmp.gt.f32.partialorder %v440_v11, 0.0 }
  0xeb   : > { %v445_v15 = vpop.f32.mrf.mxu0 }
  0xec   : > { %v446_v16 = vadd.f32 %v445_v15, %v1589_v8  ;;  %vm535_vm1 = vcmp.gt.f32.partialorder %v442_v13, 0.0  ;;  %v567_v17 = vmul.f32 0.2, %v442_v13  ;;  %v598_v23 = vsel %vm534_vm2, %v440_v11, %v566_v14 }
  0xed   : > { %v447_v18 = vpop.f32.mrf.mxu0 }
  0xee   : > { %v448_v19 = vadd.f32 %v447_v18, %v1591_v9  ;;  %v599_v20 = vsel %vm535_vm1, %v442_v13, %v567_v17  ;;  %v568_v21 = vmul.f32 0.2, %v446_v16  ;;  %vm536_vm4 = vcmp.gt.f32.partialorder %v446_v16, 0.0 }
  0xef   : > { %v451_v22 = vpop.f32.mrf.mxu0  ;;  %733 = vmatprep.mubr.f32.mxu1 %v599_v20 }
  0xf0   : > { %v569_v24 = vmul.f32 0.2, %v448_v19  ;;  %v452_v25 = vadd.f32 %v451_v22, %v1589_v8  ;;  %734 = vmatmul.mubr.f32.vlgmr.msra.gmra.mxu1 %v598_v23  ;;  %vm537_vm3 = vcmp.gt.f32.partialorder %v448_v19, 0.0  ;;  %v600_v31 = vsel %vm536_vm4, %v446_v16, %v568_v21 }
  0xf1   : > { %v453_v26 = vpop.f32.mrf.mxu0 }
  0xf2   : > { %v454_v27 = vadd.f32 %v453_v26, %v1591_v9  ;;  %v601_v28 = vsel %vm537_vm3, %v448_v19, %v569_v24  ;;  %v570_v29 = vmul.f32 0.2, %v452_v25  ;;  %vm538_vm6 = vcmp.gt.f32.partialorder %v452_v25, 0.0 }
  0xf3   : > { %v457_v30 = vpop.f32.mrf.mxu0  ;;  %738 = vmatprep.mubr.f32.mxu1 %v601_v28 }
  0xf4   : > { %v571_v32 = vmul.f32 0.2, %v454_v27  ;;  %v458_v33 = vadd.f32 %v457_v30, %v1589_v8  ;;  %739 = vmatmul.mubr.f32.gmra.mxu1 %v600_v31  ;;  %vm539_vm5 = vcmp.gt.f32.partialorder %v454_v27, 0.0  ;;  %v602_v39 = vsel %vm538_vm6, %v452_v25, %v570_v29 }
  0xf5   : > { %v459_v34 = vpop.f32.mrf.mxu0 }
  0xf6   : > { %v460_v35 = vadd.f32 %v459_v34, %v1591_v9  ;;  %v603_v36 = vsel %vm539_vm5, %v454_v27, %v571_v32  ;;  %v572_v37 = vmul.f32 0.2, %v458_v33  ;;  %vm540_vm8 = vcmp.gt.f32.partialorder %v458_v33, 0.0 }
  0xf7   : > { %v463_v38 = vpop.f32.mrf.mxu0  ;;  %743 = vmatprep.mubr.f32.mxu1 %v603_v36 }
  0xf8   : > { %v573_v40 = vmul.f32 0.2, %v460_v35  ;;  %v464_v41 = vadd.f32 %v463_v38, %v1589_v8  ;;  %744 = vmatmul.mubr.f32.gmra.mxu1 %v602_v39  ;;  %vm541_vm7 = vcmp.gt.f32.partialorder %v460_v35, 0.0  ;;  %v604_v47 = vsel %vm540_vm8, %v458_v33, %v572_v37 }
  0xf9   : > { %v465_v42 = vpop.f32.mrf.mxu0 }
  0xfa   : > { %v466_v43 = vadd.f32 %v465_v42, %v1591_v9  ;;  %v605_v44 = vsel %vm541_vm7, %v460_v35, %v573_v40  ;;  %v574_v45 = vmul.f32 0.2, %v464_v41  ;;  %vm542_vm10 = vcmp.gt.f32.partialorder %v464_v41, 0.0 }
  0xfb   : > { %v469_v46 = vpop.f32.mrf.mxu0  ;;  %748 = vmatprep.mubr.f32.mxu1 %v605_v44 }
  0xfc   : > { %v575_v48 = vmul.f32 0.2, %v466_v43  ;;  %v470_v49 = vadd.f32 %v469_v46, %v1589_v8  ;;  %749 = vmatmul.mubr.f32.gmra.mxu1 %v604_v47  ;;  %vm543_vm9 = vcmp.gt.f32.partialorder %v466_v43, 0.0  ;;  %v606_v55 = vsel %vm542_vm10, %v464_v41, %v574_v45 }
  0xfd   : > { %v471_v50 = vpop.f32.mrf.mxu0 }
  0xfe   : > { %v472_v51 = vadd.f32 %v471_v50, %v1591_v9  ;;  %v607_v52 = vsel %vm543_vm9, %v466_v43, %v575_v48  ;;  %v576_v53 = vmul.f32 0.2, %v470_v49  ;;  %vm544_vm12 = vcmp.gt.f32.partialorder %v470_v49, 0.0 }
  0xff   : > { %v475_v54 = vpop.f32.mrf.mxu0  ;;  %753 = vmatprep.mubr.f32.mxu1 %v607_v52 }
 0x100   : > { %v577_v56 = vmul.f32 0.2, %v472_v51  ;;  %v476_v57 = vadd.f32 %v475_v54, %v1589_v8  ;;  %754 = vmatmul.mubr.f32.gmra.mxu1 %v606_v55  ;;  %vm545_vm11 = vcmp.gt.f32.partialorder %v472_v51, 0.0  ;;  %v608_v63 = vsel %vm544_vm12, %v470_v49, %v576_v53 }
 0x101   : > { %v477_v58 = vpop.f32.mrf.mxu0 }
 0x102   : > { %v478_v59 = vadd.f32 %v477_v58, %v1591_v9  ;;  %v609_v60 = vsel %vm545_vm11, %v472_v51, %v577_v56  ;;  %v578_v61 = vmul.f32 0.2, %v476_v57  ;;  %vm546_vm14 = vcmp.gt.f32.partialorder %v476_v57, 0.0 }
 0x103   : > { %v481_v62 = vpop.f32.mrf.mxu0  ;;  %758 = vmatprep.mubr.f32.mxu1 %v609_v60 }
 0x104   : > { %v579_v0 = vmul.f32 0.2, %v478_v59  ;;  %v482_v1 = vadd.f32 %v481_v62, %v1589_v8  ;;  %759 = vmatmul.mubr.f32.gmra.mxu1 %v608_v63  ;;  %vm547_vm13 = vcmp.gt.f32.partialorder %v478_v59, 0.0  ;;  %v610_v12 = vsel %vm546_vm14, %v476_v57, %v578_v61 }
 0x105   : > { %v483_v2 = vpop.f32.mrf.mxu0 }
 0x106   : > { %v484_v6 = vadd.f32 %v483_v2, %v1591_v9  ;;  %v611_v7 = vsel %vm547_vm13, %v478_v59, %v579_v0  ;;  %v580_v10 = vmul.f32 0.2, %v482_v1  ;;  %vm548_vm0 = vcmp.gt.f32.partialorder %v482_v1, 0.0 }
 0x107   : > { %v487_v11 = vpop.f32.mrf.mxu0  ;;  %763 = vmatprep.mubr.f32.mxu1 %v611_v7 }
 0x108   : > { %v581_v13 = vmul.f32 0.2, %v484_v6  ;;  %v488_v14 = vadd.f32 %v487_v11, %v1589_v8  ;;  %764 = vmatmul.mubr.f32.gmra.mxu1 %v610_v12  ;;  %vm549_vm15 = vcmp.gt.f32.partialorder %v484_v6, 0.0  ;;  %v612_v20 = vsel %vm548_vm0, %v482_v1, %v580_v10 }
 0x109   : > { %v489_v15 = vpop.f32.mrf.mxu0 }
 0x10a   : > { %v490_v16 = vadd.f32 %v489_v15, %v1591_v9  ;;  %v613_v17 = vsel %vm549_vm15, %v484_v6, %v581_v13  ;;  %v582_v18 = vmul.f32 0.2, %v488_v14  ;;  %vm550_vm2 = vcmp.gt.f32.partialorder %v488_v14, 0.0 }
 0x10b   : > { %v493_v19 = vpop.f32.mrf.mxu0  ;;  %768 = vmatprep.mubr.f32.mxu1 %v613_v17 }
 0x10c   : > { %v583_v21 = vmul.f32 0.2, %v490_v16  ;;  %v494_v22 = vadd.f32 %v493_v19, %v1589_v8  ;;  %769 = vmatmul.mubr.f32.gmra.mxu1 %v612_v20  ;;  %vm551_vm1 = vcmp.gt.f32.partialorder %v490_v16, 0.0  ;;  %v614_v28 = vsel %vm550_vm2, %v488_v14, %v582_v18 }
 0x10d   : > { %v495_v23 = vpop.f32.mrf.mxu0 }
 0x10e   : > { %v496_v24 = vadd.f32 %v495_v23, %v1591_v9  ;;  %v615_v25 = vsel %vm551_vm1, %v490_v16, %v583_v21  ;;  %v584_v26 = vmul.f32 0.2, %v494_v22  ;;  %vm552_vm4 = vcmp.gt.f32.partialorder %v494_v22, 0.0 }
 0x10f   : > { %v499_v27 = vpop.f32.mrf.mxu0  ;;  %773 = vmatprep.mubr.f32.mxu1 %v615_v25  ;;  %vm1287_vm1 = vmmov 0  }
 0x110   : > { %v585_v29 = vmul.f32 0.2, %v496_v24  ;;  %v500_v30 = vadd.f32 %v499_v27, %v1589_v8  ;;  %774 = vmatmul.mubr.f32.gmra.mxu1 %v614_v28  ;;  %vm553_vm3 = vcmp.gt.f32.partialorder %v496_v24, 0.0  ;;  %v616_v36 = vsel %vm552_vm4, %v494_v22, %v584_v26  ;;  %1174 = vmatprep.mubr.msk.f32.mxu0 %vm1287_vm1, %v1286_v5  ;;  %v863_v22 = vld [vmem:[#allocation2] sm:$0x1] }
 0x111   : > { %v501_v31 = vpop.f32.mrf.mxu0 }
 0x112   : > { %v502_v32 = vadd.f32 %v501_v31, %v1591_v9  ;;  %v617_v33 = vsel %vm553_vm3, %v496_v24, %v585_v29  ;;  %v586_v34 = vmul.f32 0.2, %v500_v30  ;;  %vm554_vm6 = vcmp.gt.f32.partialorder %v500_v30, 0.0 }
 0x113   : > { %v505_v35 = vpop.f32.mrf.mxu0  ;;  %778 = vmatprep.mubr.f32.mxu1 %v617_v33  ;;  %v1288_v24 = vmov 0  }
 0x114   : > { %v587_v37 = vmul.f32 0.2, %v502_v32  ;;  %v506_v38 = vadd.f32 %v505_v35, %v1589_v8  ;;  %779 = vmatmul.mubr.f32.gmra.mxu1 %v616_v36  ;;  %vm555_vm5 = vcmp.gt.f32.partialorder %v502_v32, 0.0  ;;  %v618_v44 = vsel %vm554_vm6, %v500_v30, %v586_v34  ;;  %1219 = vset.pattern.permute.xlu0 %v1288_v24 }
 0x115   : > { %v507_v39 = vpop.f32.mrf.mxu0  ;;  %866 = vperm.xlu0 %1219, %v863_v22  }
 0x116   : > { %v508_v40 = vadd.f32 %v507_v39, %v1591_v9  ;;  %v619_v41 = vsel %vm555_vm5, %v502_v32, %v587_v37  ;;  %v588_v42 = vmul.f32 0.2, %v506_v38  ;;  %vm556_vm8 = vcmp.gt.f32.partialorder %v506_v38, 0.0 }
 0x117   : > { %v511_v43 = vpop.f32.mrf.mxu0  ;;  %783 = vmatprep.mubr.f32.mxu1 %v619_v41 }
 0x118   : > { %v589_v45 = vmul.f32 0.2, %v508_v40  ;;  %v512_v46 = vadd.f32 %v511_v43, %v1589_v8  ;;  %784 = vmatmul.mubr.f32.gmra.mxu1 %v618_v44  ;;  %vm557_vm7 = vcmp.gt.f32.partialorder %v508_v40, 0.0  ;;  %v620_v52 = vsel %vm556_vm8, %v506_v38, %v588_v42 }
 0x119   : > { %v513_v47 = vpop.f32.mrf.mxu0 }
 0x11a   : > { %v514_v48 = vadd.f32 %v513_v47, %v1591_v9  ;;  %v621_v49 = vsel %vm557_vm7, %v508_v40, %v589_v45  ;;  %v590_v50 = vmul.f32 0.2, %v512_v46  ;;  %vm558_vm10 = vcmp.gt.f32.partialorder %v512_v46, 0.0 }
 0x11b   : > { %v517_v51 = vpop.f32.mrf.mxu0  ;;  %788 = vmatprep.mubr.f32.mxu1 %v621_v49 }
 0x11c   : > { %v591_v53 = vmul.f32 0.2, %v514_v48  ;;  %v518_v54 = vadd.f32 %v517_v51, %v1589_v8  ;;  %789 = vmatmul.mubr.f32.gmra.mxu1 %v620_v52  ;;  %vm559_vm9 = vcmp.gt.f32.partialorder %v514_v48, 0.0  ;;  %v622_v60 = vsel %vm558_vm10, %v512_v46, %v590_v50 }
 0x11d   : > { %v519_v55 = vpop.f32.mrf.mxu0 }
 0x11e   : > { %v520_v56 = vadd.f32 %v519_v55, %v1591_v9  ;;  %v623_v57 = vsel %vm559_vm9, %v514_v48, %v591_v53  ;;  %v592_v58 = vmul.f32 0.2, %v518_v54  ;;  %vm560_vm12 = vcmp.gt.f32.partialorder %v518_v54, 0.0 }
 0x11f   : > { %v523_v59 = vpop.f32.mrf.mxu0  ;;  %793 = vmatprep.mubr.f32.mxu1 %v623_v57 }
 0x120   : > { %v593_v61 = vmul.f32 0.2, %v520_v56  ;;  %v524_v62 = vadd.f32 %v523_v59, %v1589_v8  ;;  %794 = vmatmul.mubr.f32.gmra.mxu1 %v622_v60  ;;  %vm561_vm11 = vcmp.gt.f32.partialorder %v520_v56, 0.0  ;;  %v624_v7 = vsel %vm560_vm12, %v518_v54, %v592_v58 }
 0x121   : > { %v525_v63 = vpop.f32.mrf.mxu0 }
 0x122   : > { %v526_v0 = vadd.f32 %v525_v63, %v1591_v9  ;;  %v625_v1 = vsel %vm561_vm11, %v520_v56, %v593_v61  ;;  %v594_v2 = vmul.f32 0.2, %v524_v62  ;;  %vm562_vm14 = vcmp.gt.f32.partialorder %v524_v62, 0.0 }
 0x123   : > { %v529_v6 = vpop.f32.mrf.mxu0  ;;  %798 = vmatprep.mubr.f32.mxu1 %v625_v1 }
 0x124   : > { %v595_v10 = vmul.f32 0.2, %v526_v0  ;;  %v530_v11 = vadd.f32 %v529_v6, %v1589_v8  ;;  %799 = vmatmul.mubr.f32.gmra.mxu1 %v624_v7  ;;  %vm563_vm13 = vcmp.gt.f32.partialorder %v526_v0, 0.0  ;;  %v626_v16 = vsel %vm562_vm14, %v524_v62, %v594_v2  ;;  %v1645_v62 = vld [vmem:[%s1735_s4] ss:$0 sm:$0xff] }
 0x125   : > { %v531_v12 = vpop.f32.mrf.mxu0 }
 0x126   : > { %v532_v13 = vadd.f32 %v531_v12, %v1591_v9  ;;  %v627_v14 = vsel %vm563_vm13, %v526_v0, %v595_v10  ;;  %v596_v15 = vmul.f32 0.2, %v530_v11  ;;  %vm564_vm0 = vcmp.gt.f32.partialorder %v530_v11, 0.0 }
 0x127   : > { %803 = vmatprep.mubr.f32.mxu1 %v627_v14 }
 0x128   : > { %v597_v17 = vmul.f32 0.2, %v532_v13  ;;  %804 = vmatmul.mubr.f32.gmra.mxu1 %v626_v16  ;;  %vm565_vm15 = vcmp.gt.f32.partialorder %v532_v13, 0.0  ;;  %v628_v19 = vsel %vm564_vm0, %v530_v11, %v596_v15 }
 0x12a   : > { %v629_v18 = vsel %vm565_vm15, %v532_v13, %v597_v17 }
 0x12b   : > { %808 = vmatprep.mubr.f32.mxu1 %v629_v18 }
 0x12c   : > { %809 = vmatmul.mubr.f32.gmra.mxu1 %v628_v19 }
 0x1b0   : > { %v1077_v20 = vpop.f32.mrf.mxu1 }
 0x1b2   : > { %v1078_v8 = vpop.f32.mrf.mxu1 }
 0x1b3   : > { %v1625_v21 = vadd.f32 %v1078_v8, %v1077_v20 }
 0x1b4   : > { %v1080_v9 = vpop.f32.mrf.mxu1 }
 0x1b6   : > { %v1081_v23 = vpop.f32.mrf.mxu1 }
 0x1b7   : > { %v1628_v25 = vadd.f32 %v1081_v23, %v1080_v9 }
 0x1b8   : > { %v1083_v26 = vpop.f32.mrf.mxu1 }
 0x1ba   : > { %v1084_v27 = vpop.f32.mrf.mxu1 }
 0x1bb   : > { %v1630_v28 = vadd.f32 %v1084_v27, %v1083_v26 }
 0x1bc   : > { %v1086_v29 = vpop.f32.mrf.mxu1 }
 0x1be   : > { %v1087_v30 = vpop.f32.mrf.mxu1 }
 0x1bf   : > { %v1632_v31 = vadd.f32 %v1087_v30, %v1086_v29 }
 0x1c0   : > { %v1089_v32 = vpop.f32.mrf.mxu1 }
 0x1c2   : > { %v1090_v33 = vpop.f32.mrf.mxu1 }
 0x1c3   : > { %v1634_v34 = vadd.f32 %v1090_v33, %v1089_v32 }
 0x1c4   : > { %v1092_v35 = vpop.f32.mrf.mxu1 }
 0x1c6   : > { %v1093_v36 = vpop.f32.mrf.mxu1 }
 0x1c7   : > { %v1636_v37 = vadd.f32 %v1093_v36, %v1092_v35 }
 0x1c8   : > { %v1095_v38 = vpop.f32.mrf.mxu1 }
 0x1ca   : > { %v1096_v39 = vpop.f32.mrf.mxu1 }
 0x1cb   : > { %v1638_v40 = vadd.f32 %v1096_v39, %v1095_v38 }
 0x1cc   : > { %v1098_v41 = vpop.f32.mrf.mxu1 }
 0x1cd   : > { %v766_v38 = vadd.f32 %v1638_v40, %v1645_v62 }
 0x1ce   : > { %v1099_v42 = vpop.f32.mrf.mxu1 }
 0x1cf   : > { %v1640_v43 = vadd.f32 %v1099_v42, %v1098_v41  ;;  %v761_v42 = vadd.f32 %v1636_v37, %v1645_v62  ;;  %vm820_vm11 = vcmp.gt.f32.partialorder %v766_v38, 0.0 }
 0x1d0   : > { %v1101_v44 = vpop.f32.mrf.mxu1 }
 0x1d1   : > { %v771_v33 = vadd.f32 %v1640_v43, %v1645_v62  ;;  %vm819_vm12 = vcmp.gt.f32.partialorder %v761_v42, 0.0 }
 0x1d2   : > { %v1102_v45 = vpop.f32.mrf.mxu1 }
 0x1d3   : > { %v1103_v23 = vadd.f32 %v1102_v45, %v1101_v44  ;;  %v837_v39 = vmul.f32 0.2, %v771_v33  ;;  %vm821_vm10 = vcmp.gt.f32.partialorder %v771_v33, 0.0  ;;  %v836_v44 = vmul.f32 0.2, %v766_v38 }
 0x1d4   : > { %v1104_v46 = vpop.f32.mrf.mxu1  ;;  %v756_v45 = vadd.f32 %v1634_v34, %v1645_v62 }
 0x1d5   : > { %v776_v29 = vadd.f32 %v1103_v23, %v1645_v62  ;;  %v853_v43 = vsel %vm821_vm10, %v771_v33, %v837_v39  ;;  %v852_v40 = vsel %vm820_vm11, %v766_v38, %v836_v44 }
 0x1d6   : > { %v1105_v47 = vpop.f32.mrf.mxu1  ;;  %vm818_vm13 = vcmp.gt.f32.partialorder %v756_v45, 0.0 }
 0x1d7   : > { %v1106_v20 = vadd.f32 %v1105_v47, %v1104_v46  ;;  %v838_v35 = vmul.f32 0.2, %v776_v29  ;;  %vm822_vm9 = vcmp.gt.f32.partialorder %v776_v29, 0.0  ;;  %v835_v46 = vmul.f32 0.2, %v761_v42 }
 0x1d8   : > { %v1107_v48 = vpop.f32.mrf.mxu1  ;;  %v751_v47 = vadd.f32 %v1632_v31, %v1645_v62 }
 0x1d9   : > { %v781_v24 = vadd.f32 %v1106_v20, %v1645_v62  ;;  %v854_v41 = vsel %vm822_vm9, %v776_v29, %v838_v35  ;;  %v851_v37 = vsel %vm819_vm12, %v761_v42, %v835_v46 }
 0x1da   : > { %v1108_v49 = vpop.f32.mrf.mxu1  ;;  %vm817_vm14 = vcmp.gt.f32.partialorder %v751_v47, 0.0 }
 0x1db   : > { %v1109_v16 = vadd.f32 %v1108_v49, %v1107_v48  ;;  %v839_v30 = vmul.f32 0.2, %v781_v24  ;;  %vm823_vm8 = vcmp.gt.f32.partialorder %v781_v24, 0.0  ;;  %v834_v48 = vmul.f32 0.2, %v756_v45 }
 0x1dc   : > { %v1110_v50 = vpop.f32.mrf.mxu1  ;;  %v746_v49 = vadd.f32 %v1630_v28, %v1645_v62 }
 0x1dd   : > { %v786_v8 = vadd.f32 %v1109_v16, %v1645_v62  ;;  %v855_v36 = vsel %vm823_vm8, %v781_v24, %v839_v30  ;;  %v850_v34 = vsel %vm818_vm13, %v756_v45, %v834_v48 }
 0x1de   : > { %v1111_v51 = vpop.f32.mrf.mxu1  ;;  %vm816_vm15 = vcmp.gt.f32.partialorder %v746_v49, 0.0 }
 0x1df   : > { %v1112_v12 = vadd.f32 %v1111_v51, %v1110_v50  ;;  %v840_v26 = vmul.f32 0.2, %v786_v8  ;;  %vm824_vm7 = vcmp.gt.f32.partialorder %v786_v8, 0.0  ;;  %v833_v50 = vmul.f32 0.2, %v751_v47 }
 0x1e0   : > { %v1113_v52 = vpop.f32.mrf.mxu1  ;;  %v741_v51 = vadd.f32 %v1628_v25, %v1645_v62 }
 0x1e1   : > { %v791_v17 = vadd.f32 %v1112_v12, %v1645_v62  ;;  %v856_v32 = vsel %vm824_vm7, %v786_v8, %v840_v26  ;;  %v849_v31 = vsel %vm817_vm14, %v751_v47, %v833_v50 }
 0x1e2   : > { %v1114_v53 = vpop.f32.mrf.mxu1  ;;  %vm815_vm0 = vcmp.gt.f32.partialorder %v741_v51, 0.0 }
 0x1e3   : > { %v1115_v6 = vadd.f32 %v1114_v53, %v1113_v52  ;;  %v841_v9 = vmul.f32 0.2, %v791_v17  ;;  %vm825_vm6 = vcmp.gt.f32.partialorder %v791_v17, 0.0  ;;  %v832_v52 = vmul.f32 0.2, %v746_v49 }
 0x1e4   : > { %v1116_v54 = vpop.f32.mrf.mxu1  ;;  %v736_v53 = vadd.f32 %v1625_v21, %v1645_v62  ;;  %v862_v21 = vld [vmem:[%s1736_s5] sm:$0x1] }
 0x1e5   : > { %v796_v13 = vadd.f32 %v1115_v6, %v1645_v62  ;;  %v857_v27 = vsel %vm825_vm6, %v791_v17, %v841_v9  ;;  %v848_v28 = vsel %vm816_vm15, %v746_v49, %v832_v52 }
 0x1e6   : > { %v1117_v55 = vpop.f32.mrf.mxu1  ;;  %vm814_vm1 = vcmp.gt.f32.partialorder %v736_v53, 0.0 }
 0x1e7   : > { %v1118_v63 = vadd.f32 %v1117_v55, %v1116_v54  ;;  %v842_v18 = vmul.f32 0.2, %v796_v13  ;;  %vm826_vm5 = vcmp.gt.f32.partialorder %v796_v13, 0.0  ;;  %v831_v54 = vmul.f32 0.2, %v741_v51 }
 0x1e8   : > { %v1119_v56 = vpop.f32.mrf.mxu1  ;;  %v830_v55 = vmul.f32 0.2, %v736_v53 }
 0x1e9   : > { %v801_v7 = vadd.f32 %v1118_v63, %v1645_v62  ;;  %v858_v22 = vsel %vm826_vm5, %v796_v13, %v842_v18 }
 0x1ea   : > { %v1120_v57 = vpop.f32.mrf.mxu1  ;;  %v846_v25 = vsel %vm814_vm1, %v736_v53, %v830_v55 }
 0x1eb   : > { %v1121_v59 = vadd.f32 %v1120_v57, %v1119_v56  ;;  %v843_v14 = vmul.f32 0.2, %v801_v7  ;;  %vm827_vm4 = vcmp.gt.f32.partialorder %v801_v7, 0.0  ;;  %v847_v56 = vsel %vm815_vm0, %v741_v51, %v831_v54  ;;  %v867_v57 = vpop.permute.xlu0 %866 }
 0x1ec   : > { %v1122_v58 = vpop.f32.mrf.mxu1 }
 0x1ed   : > { %v806_v0 = vadd.f32 %v1121_v59, %v1645_v62  ;;  %v859_v19 = vsel %vm827_vm4, %v801_v7, %v843_v14 }
 0x1ee   : > { %v1123_v60 = vpop.f32.mrf.mxu1 }
 0x1ef   : > { %v1124_v61 = vadd.f32 %v1123_v60, %v1122_v58  ;;  %v844_v10 = vmul.f32 0.2, %v806_v0  ;;  %vm828_vm3 = vcmp.gt.f32.partialorder %v806_v0, 0.0  ;;  %v872_v58 = vrot.slane %v867_v57, %v316_v4 }
 0x1f1   : > { %v811_v1 = vadd.f32 %v1124_v61, %v1645_v62  ;;  %v860_v15 = vsel %vm828_vm3, %v806_v0, %v844_v10 }
 0x1f3   : > { %v845_v2 = vmul.f32 0.2, %v811_v1  ;;  %vm829_vm2 = vcmp.gt.f32.partialorder %v811_v1, 0.0 }
 0x1f5   : > { %v861_v11 = vsel %vm829_vm2, %v811_v1, %v845_v2 }
 0x1f6   : > { %1143 = vmatpush3.xpose.msra.mxu0 %v861_v11 }
 0x1f7   : > { %1144 = vmatprep.subr.mxu0 %v1286_v5 }
 0x1fa   : > { %1145 = vmatpush3.xpose.msra.mxu0 %v860_v15 }
 0x1fb   : > { %1146 = vmatprep.subr.mxu0 %v1286_v5 }
 0x1fe   : > { %1147 = vmatpush3.xpose.msra.mxu0 %v859_v19 }
 0x1ff   : > { %1148 = vmatprep.subr.mxu0 %v1286_v5 }
 0x202   : > { %1149 = vmatpush3.xpose.msra.mxu0 %v858_v22 }
 0x203   : > { %1150 = vmatprep.subr.mxu0 %v1286_v5 }
 0x206   : > { %1151 = vmatpush3.xpose.msra.mxu0 %v857_v27 }
 0x207   : > { %1152 = vmatprep.subr.mxu0 %v1286_v5 }
 0x20a   : > { %1153 = vmatpush3.xpose.msra.mxu0 %v856_v32 }
 0x20b   : > { %1154 = vmatprep.subr.mxu0 %v1286_v5 }
 0x20e   : > { %1155 = vmatpush3.xpose.msra.mxu0 %v855_v36 }
 0x20f   : > { %1156 = vmatprep.subr.mxu0 %v1286_v5 }
 0x212   : > { %1157 = vmatpush3.xpose.msra.mxu0 %v854_v41 }
 0x213   : > { %1158 = vmatprep.subr.mxu0 %v1286_v5 }
 0x216   : > { %1159 = vmatpush3.xpose.msra.mxu0 %v853_v43 }
 0x217   : > { %1160 = vmatprep.subr.mxu0 %v1286_v5 }
 0x21a   : > { %1161 = vmatpush3.xpose.msra.mxu0 %v852_v40 }
 0x21b   : > { %1162 = vmatprep.subr.mxu0 %v1286_v5 }
 0x21e   : > { %1163 = vmatpush3.xpose.msra.mxu0 %v851_v37 }
 0x21f   : > { %1164 = vmatprep.subr.mxu0 %v1286_v5 }
 0x222   : > { %1165 = vmatpush3.xpose.msra.mxu0 %v850_v34 }
 0x223   : > { %1166 = vmatprep.subr.mxu0 %v1286_v5 }
 0x226   : > { %1167 = vmatpush3.xpose.msra.mxu0 %v849_v31 }
 0x227   : > { %1168 = vmatprep.subr.mxu0 %v1286_v5 }
 0x22a   : > { %1169 = vmatpush3.xpose.msra.mxu0 %v848_v28 }
 0x22b   : > { %1170 = vmatprep.subr.mxu0 %v1286_v5 }
 0x22e   : > { %1171 = vmatpush3.xpose.msra.mxu0 %v847_v56 }
 0x22f   : > { %1172 = vmatprep.subr.mxu0 %v1286_v5 }
 0x232   : > { %1173 = vmatpush3.xpose.msra.mxu0 %v846_v25 }
 0x235   : > { %1175 = vmatmul.mubr.f32.vlgmr.msra.gmra.mxu0 %v862_v21 }
 0x2f5   : > { %v939_v59 = vpop.f32.mrf.mxu0 }
 0x2f6   : > { %v940_v60 = vadd.f32 %v939_v59, %v872_v58 }
 0x2f7   : > { %v1176_v61 = vpop.f32.mrf.mxu0 }
 0x2f8   : > { %v1041_v62 = vmul.f32 -1.442695, %v940_v60 }
 0x2fa   : > { %1220 = vpow2.f32 %v1041_v62 }
 0x307   : > { %v1221_v63 = vpop.eup %1220 }
 0x308   : > { %v946_v5 = vadd.f32 1.0, %v1221_v63 }
 0x30a   : > { %1222 = vrcp.f32 %v946_v5 }
 0x317   : > { %v1223_v3 = vpop.eup %1222 }
 0x318   : > { %949 = vst [vmem:[%s273_s22] sm:$0x1] %v1223_v3 }
 0x319   : > { %1237 = shalt.err (!%p1234_p3)
}
 0x31a   : > { %s1238_s20 = scalar_lea.hbm %s1696_s25, 16  ;;  %s1242_s19 = scalar_lea.hbm %s1738_s7, 32 }
 0x31b   : > { %p1239_p4 = scmp.ne.s32.totalorder %s1696_s25, %s1238_s20  ;;  %p1243_p9 = scmp.lt.s32.totalorder %s1696_s25, %s1738_s7 }
 0x31c   : > { %p1244_p10 = scmp.lt.s32.totalorder %s1242_s19, %s1238_s20 }
 0x31d   : > { %p1240_p7 = pnand %p1239_p4, %p1368_p5 }
 0x31e   : > { %p1245_p11 = por %p1244_p10, %p1243_p9 }
 0x31f   : > { %p1241_p8 = pneg %p1240_p7 }
 0x321   : > { %p1246_p12 = pnand %p1245_p11, %p1241_p8 }
 0x323   : > { %1249 = shalt.err (!%p1246_p12)
}
 0x324   : > { %1177 = dma.vmem_to_hbm [thread:$0]  (%p1368_p5), %s964_s18, 16, %s1696_s25, %s951_s6  }
 0x325 PF: > { %p1183_p13 = scmp.ge.s32.totalorder %s1284_s29, 2  ;;  %s975_s22 = sand.u32 1, %s1272_s26  }
 0x326   : > { %s976_s23 = scalar_lea.sflag [#allocation4], %s975_s22 }
 0x327   : > { %p1180_p0 = pnand %p1183_p13, %p1372_p6 }
 0x329   : > { %p1181_p1 = pneg %p1180_p0 }
 0x32b   : > { %1267 = dma.done.wait (%p1181_p1), %s976_s23, 16  }
 0x32c   : > { %1269 = vsyncadd (%p1181_p1), %s976_s23, 4294967280  ;;  %p19_p2 = scmp.ge.s32.totalorder %s1356_s8, 4   ;;  %s1741_s26 = smov %s1276_s27 }
 0x32d   : > { %s1742_s27 = smov %s1280_s28  ;;  %s1743_s28 = smov %s1366_s11 }
 0x32e   : > { %s1744_s29 = smov %s1356_s8  ;;  %21 = sbr.rel (!%p19_p2) target bundleno = 6 (0x6), region = 83 }
 0x333   :  { %980 = vsyncpa [#allocation4], 1 }
 0x334   :  { %982 = vsyncpa [#allocation4 + $0x1], 1 }

</bundles_post_ra>
